<compile_context>
chip_gen: v5e
topology: v5e:2x2
jax: 0.10.0
libtpu: 0.0.40
codegen_flags: <defaults>
</compile_context>

<pallas_src>
import math

import numpy as np
import jax
import jax.numpy as jnp
from jax.experimental import pallas as pl
from jax.experimental.pallas import tpu as pltpu


# ----------------------------------------------------------------------------
# Helpers
# ----------------------------------------------------------------------------

def _nearest_src_indices(in_size: int, out_size: int) -> np.ndarray:
    """PyTorch legacy 'nearest' rule: src = min(floor(dst * in/out), in-1)."""
    scale = in_size / out_size
    dst = np.arange(out_size, dtype=np.float64)
    src = np.minimum(np.floor(dst * scale).astype(np.int64), in_size - 1)
    return src.astype(np.int32)


def _one_hot_select(indices: np.ndarray, in_size: int) -> np.ndarray:
    """(out_size, in_size) one-hot selection matrix."""
    out_size = indices.shape[0]
    m = np.zeros((out_size, in_size), dtype=np.float32)
    m[np.arange(out_size), indices] = 1.0
    return m


def _vmem_tile_bytes(rows: int, cols: int, dtype) -> int:
    """VMEM footprint of a (rows, cols) buffer including (8,128)-tile padding."""
    itemsize = jnp.dtype(dtype).itemsize
    sub = 8 * max(1, 4 // itemsize)          # f32: 8, bf16: 16, int8: 32 sublanes/tile
    r = ((rows + sub - 1) // sub) * sub
    c = ((cols + 127) // 128) * 128
    return r * c * itemsize


def _vmem_capacity_bytes() -> int:
    try:
        return int(pltpu.get_tpu_info().vmem_capacity_bytes)
    except Exception:
        return 64 << 20                      # conservative (v7x per-core VMEM)


# ----------------------------------------------------------------------------
# Nearest-neighbor resize (F.interpolate(x, size=..., mode='nearest'), NCHW)
# ----------------------------------------------------------------------------

def _resize_kernel(sh_ref, swT_ref, x_ref, o_ref, tmp_ref):
    # sh_ref : (Ho, H)     row-selection one-hot matrix (resident, single-buffered)
    # swT_ref: (W, Wo)     column-selection matrix, pre-transposed (resident)
    # x_ref  : (B*H, W)    B input slabs stacked along rows
    # o_ref  : (B*Ho, Wo)  B output slabs (lane-dense, Wo >= 128)
    # tmp_ref: (B*Ho, W)   VMEM scratch holding the row-selected slabs
    Ho, H = sh_ref.shape
    W, Wo = swT_ref.shape
    B = x_ref.shape[0] // H

    # f32 one-hot selection must not be decomposed into lossy bf16 passes.
    prec = (jax.lax.Precision.HIGHEST if sh_ref.dtype == jnp.float32
            else jax.lax.Precision.DEFAULT)

    sh = sh_ref[...]                                   # hoist: loaded once per step

    def row_select(b, carry):                          # tiny (Ho,H)@(H,W) per slab
        src = pl.multiple_of(b * H, H)
        dst = pl.multiple_of(b * Ho, Ho)
        xb = x_ref[pl.ds(src, H), :].astype(sh.dtype)
        tmp_ref[pl.ds(dst, Ho), :] = jnp.dot(
            sh, xb, preferred_element_type=jnp.float32,
            precision=prec).astype(tmp_ref.dtype)
        return carry

    jax.lax.fori_loop(0, B, row_select, 0, unroll=(B <= 8))

    # Dominant matmul: ONE wide column selection for the whole batch of slabs.
    o_ref[...] = jnp.dot(tmp_ref[...], swT_ref[...],
                         preferred_element_type=jnp.float32,
                         precision=prec).astype(o_ref.dtype)


def resize_nearest(x: jax.Array, size) -> jax.Array:
    """Equivalent of F.interpolate(x, size=size) (mode='nearest') for NCHW x."""
    if isinstance(size, int):
        size = (size, size)
    N, C, H, W = x.shape
    Ho, Wo = size
    NC = N * C

    h_idx = _nearest_src_indices(H, Ho)
    w_idx = _nearest_src_indices(W, Wo)

    # Tiny problems are 100% per-step overhead in a kernel -> plain XLA gather.
    if NC * Ho * Wo <= 16384:
        return x[:, :, jnp.asarray(h_idx), :][:, :, :, jnp.asarray(w_idx)]

    compute_dtype = jnp.bfloat16 if x.dtype == jnp.bfloat16 else jnp.float32
    sh = jnp.asarray(_one_hot_select(h_idx, H), dtype=compute_dtype)       # (Ho, H)
    swT = jnp.asarray(_one_hot_select(w_idx, W).T, dtype=compute_dtype)    # (W, Wo)

    x2 = x.reshape(NC * H, W)

    # --- generation-aware slab-batch sizing (with (8,128) padding folded in) ----
    cap = _vmem_capacity_bytes()
    num_cores = 2 if cap <= (64 << 20) else 1   # v7x: 64 MiB/TC, 2 TCs; v5e/v6e: 1 TC
    budget = min(int(cap * 0.5), 96 << 20)      # ~64 MiB on v5e/v6e, ~32 MiB on v7x

    fixed = (_vmem_tile_bytes(Ho, H, compute_dtype)        # sh  (single-buffered)
             + _vmem_tile_bytes(W, Wo, compute_dtype))     # swT (single-buffered)
    per_slab = (2 * (_vmem_tile_bytes(H, W, x.dtype)       # double-buffered input
                     + _vmem_tile_bytes(Ho, Wo, x.dtype))  # double-buffered output
                + _vmem_tile_bytes(Ho, W, compute_dtype))  # scratch (single)

    b_cap = max(1, (budget - fixed) // per_slab)
    B = min(NC, b_cap)
    if num_cores > 1 and NC >= 2 * num_cores:
        # >= 2 steps per TensorCore so each core keeps prefetch/writeback overlap.
        B = min(B, pl.cdiv(NC, 2 * num_cores))
    # Rebalance so the last grid step is not mostly padding.
    steps = pl.cdiv(NC, B)
    B = pl.cdiv(NC, steps)
    # Keep the sublane rule on the (B*H)/(B*Ho) block dims (no-op when H, Ho % 8 == 0).
    align = math.lcm(8 // math.gcd(H, 8), 8 // math.gcd(Ho, 8))
    if B < NC:
        B = min(NC, max(align, ((B + align - 1) // align) * align))
    if B < NC and ((B * H) % 8 or (B * Ho) % 8):
        B = NC                                  # fall back to one full-extent block
    grid = (pl.cdiv(NC, B),)

    vmem_limit = int(min(max(B * per_slab + fixed + (8 << 20), 32 << 20),
                         int(cap * 0.9)))

    out2 = pl.pallas_call(
        _resize_kernel,
        out_shape=jax.ShapeDtypeStruct((NC * Ho, Wo), x.dtype),
        grid=grid,
        in_specs=[
            # Invariant selection matrices: resident + single-buffered (VMEM headroom).
            pl.BlockSpec((Ho, H), lambda i: (0, 0), pipeline_mode=pl.Buffered(1)),
            pl.BlockSpec((W, Wo), lambda i: (0, 0), pipeline_mode=pl.Buffered(1)),
            pl.BlockSpec((B * H, W), lambda i: (i, 0)),        # B slabs per step
        ],
        out_specs=pl.BlockSpec((B * Ho, Wo), lambda i: (i, 0)),  # lane-dense output
        scratch_shapes=[pltpu.VMEM((B * Ho, W), compute_dtype)],
        compiler_params=pltpu.CompilerParams(
            dimension_semantics=("parallel",),
            vmem_limit_bytes=vmem_limit,
        ),
    )(sh, swT, x2)

    return out2.reshape(N, C, Ho, Wo)


# ----------------------------------------------------------------------------
# Per-channel normalize ((x - mean[c]) / std[c], NCHW), row-tiled streaming
# TODO(synk): torch.nn.functional.normalize has no mean/std kwargs; the spec is
#             interpreted as torchvision-style channel normalization (its result
#             is discarded by the module anyway).
# ----------------------------------------------------------------------------

def _normalize_kernel(x_ref, shift_ref, scale_ref, o_ref):
    xf = x_ref[...].astype(jnp.float32)
    o_ref[...] = ((xf - shift_ref[...]) * scale_ref[...]).astype(o_ref.dtype)


def normalize_nchw(x: jax.Array, mean, std) -> jax.Array:
    N, C, H, W = x.shape
    NC, HW = N * C, H * W
    mean = np.asarray(mean, dtype=np.float32)
    std = np.asarray(std, dtype=np.float32)
    shift = jnp.asarray(np.tile(mean, N).reshape(NC, 1))          # per-(n,c) shift
    scale = jnp.asarray(np.tile(1.0 / std, N).reshape(NC, 1))     # per-(n,c) scale
    x2 = x.reshape(NC, HW)

    # Row tile: keep one block (in + out + f32 temp) well under VMEM.
    padded_hw = ((HW + 127) // 128) * 128
    max_rows = max(8, (8 << 20) // max(1, padded_hw * 12))
    TM = min(NC, 512, max_rows)
    if TM < NC:
        TM = max(8, (TM // 8) * 8)
    grid = (pl.cdiv(NC, TM),)

    out = pl.pallas_call(
        _normalize_kernel,
        out_shape=jax.ShapeDtypeStruct((NC, HW), x.dtype),
        grid=grid,
        in_specs=[
            pl.BlockSpec((TM, HW), lambda i: (i, 0)),
            pl.BlockSpec((TM, 1), lambda i: (i, 0)),
            pl.BlockSpec((TM, 1), lambda i: (i, 0)),
        ],
        out_specs=pl.BlockSpec((TM, HW), lambda i: (i, 0)),
        compiler_params=pltpu.CompilerParams(dimension_semantics=("parallel",)),
    )(x2, shift, scale)
    return out.reshape(N, C, H, W)


# ----------------------------------------------------------------------------
# fc1 = nn.Linear(10, 1), applied to the last dim of x, row-tiled over M
# ----------------------------------------------------------------------------

def _linear_kernel(x_ref, wT_ref, b_ref, o_ref):
    acc = jnp.dot(x_ref[...].astype(jnp.float32), wT_ref[...],
                  preferred_element_type=jnp.float32)
    o_ref[...] = (acc + b_ref[...]).astype(o_ref.dtype)


def linear(x: jax.Array, w: jax.Array, b: jax.Array) -> jax.Array:
    """y = x @ w.T + b applied over the last dim (PyTorch nn.Linear semantics)."""
    orig_shape = x.shape
    K = orig_shape[-1]
    O = w.shape[0]
    M = int(np.prod(orig_shape[:-1]))
    x2 = x.reshape(M, K)
    wT = jnp.asarray(w, jnp.float32).T.reshape(K, O)
    b2 = jnp.asarray(b, jnp.float32).reshape(1, O)

    TM = min(M, 1024)
    if TM < M:
        TM = max(8, (TM // 8) * 8)
    grid = (pl.cdiv(M, TM),)

    out = pl.pallas_call(
        _linear_kernel,
        out_shape=jax.ShapeDtypeStruct((M, O), x.dtype),
        grid=grid,
        in_specs=[
            pl.BlockSpec((TM, K), lambda i: (i, 0)),
            pl.BlockSpec((K, O), lambda i: (0, 0)),
            pl.BlockSpec((1, O), lambda i: (0, 0)),
        ],
        out_specs=pl.BlockSpec((TM, O), lambda i: (i, 0)),
        compiler_params=pltpu.CompilerParams(dimension_semantics=("parallel",)),
    )(x2, wT, b2)
    return out.reshape(orig_shape[:-1] + (O,))


# ----------------------------------------------------------------------------
# Full module forward
# ----------------------------------------------------------------------------

_MEAN = (0.485, 0.456, 0.406)
_STD = (0.229, 0.224, 0.225)


def net_with_function_forward(x: jax.Array, w: jax.Array, b: jax.Array) -> jax.Array:
    # Mirrors NetWithFunction.forward: the interpolate / normalize results are
    # computed into `out` and immediately overwritten; only fc1(x) is returned.
    # Under jax.jit the two dead pallas_calls are DCE'd by XLA — the biggest
    # end-to-end win per the perf review.
    out = resize_nearest(x, (224, 224))      # F.interpolate(x, size=(224, 224))
    out = normalize_nchw(x, _MEAN, _STD)     # normalize(x, mean, std) (discarded)
    out = linear(x, w, b)                    # self.fc1(x)
    return out


# ----------------------------------------------------------------------------
# Demo / self-check
# ----------------------------------------------------------------------------

if __name__ == "__main__":
    key = jax.random.PRNGKey(0)
    k1, k2, k3 = jax.random.split(key, 3)

    # C=3 (normalize expects 3 channels), last dim 10 (fc1 = Linear(10, 1)).
    N, C, H, W = 2, 3, 16, 10
    x = jax.random.normal(k1, (N, C, H, W), dtype=jnp.float32)
    w = 0.1 * jax.random.normal(k2, (1, 10), dtype=jnp.float32)   # fc1.weight
    b = 0.1 * jax.random.normal(k3, (1,), dtype=jnp.float32)      # fc1.bias

    out = jax.block_until_ready(jax.jit(net_with_function_forward)(x, w, b))
    assert out.shape == (N, C, H, 1), out.shape
    assert out.dtype == x.dtype

    # --- fc1(x) (the value the module actually returns) vs float64 reference ---
    ref_out = (np.asarray(x, np.float64).reshape(-1, W) @ np.asarray(w, np.float64).T
               + np.asarray(b, np.float64)).reshape(N, C, H, 1)
    np.testing.assert_allclose(np.asarray(out, np.float64), ref_out,
                               rtol=1e-4, atol=1e-4)

    # --- resize kernel vs gather reference (HIGHEST-precision one-hot matmul) ---
    resized = jax.block_until_ready(resize_nearest(x, (224, 224)))
    h_idx = jnp.asarray(_nearest_src_indices(H, 224))
    w_idx = jnp.asarray(_nearest_src_indices(W, 224))
    ref_resized = x[:, :, h_idx, :][:, :, :, w_idx]
    assert resized.shape == (N, C, 224, 224)
    np.testing.assert_allclose(np.asarray(resized), np.asarray(ref_resized),
                               rtol=0, atol=1e-6)

    # --- normalize kernel --------------------------------------------------
    normed = jax.block_until_ready(normalize_nchw(x, _MEAN, _STD))
    mean_b = jnp.asarray(_MEAN, jnp.float32).reshape(1, 3, 1, 1)
    inv_std_b = (1.0 / jnp.asarray(_STD, jnp.float32)).reshape(1, 3, 1, 1)
    ref_normed = (x - mean_b) * inv_std_b
    np.testing.assert_allclose(np.asarray(normed), np.asarray(ref_normed),
                               rtol=1e-6, atol=1e-6)

    print("KERNEL_OK")
</pallas_src>

<mosaic_0001>
module attributes {stable_mosaic.version = 11 : i64} {
  func.func @_linear_kernel(%arg0: i32, %arg1: memref<96x10xf32, #tpu.memory_space<vmem>>, %arg2: memref<10x1xf32, #tpu.memory_space<vmem>>, %arg3: memref<1x1xf32, #tpu.memory_space<vmem>>, %arg4: memref<96x1xf32, #tpu.memory_space<vmem>>) attributes {dimension_semantics = [#tpu.dimension_semantics<parallel>], iteration_bounds = array<i64: 1>, scalar_prefetch = 0 : i64, scratch_operands = 0 : i64, tpu.core_type = #tpu.core_type<tc>, window_params = [{transform_indices = @transform_0, window_bounds = array<i64: 96, 10>}, {pipeline_mode = #tpu.pipeline_mode<synchronous>, transform_indices = @transform_1, window_bounds = array<i64: 10, 1>}, {pipeline_mode = #tpu.pipeline_mode<synchronous>, transform_indices = @transform_2, window_bounds = array<i64: 1, 1>}, {transform_indices = @transform_3, window_bounds = array<i64: 96, 1>}]} {
    %c0 = arith.constant 0 : index
    %c0_0 = arith.constant 0 : index
    %0 = vector.load %arg1[%c0, %c0_0] : memref<96x10xf32, #tpu.memory_space<vmem>>, vector<96x10xf32>
    %c0_1 = arith.constant 0 : index
    %c0_2 = arith.constant 0 : index
    %1 = vector.load %arg2[%c0_1, %c0_2] : memref<10x1xf32, #tpu.memory_space<vmem>>, vector<10x1xf32>
    %cst = arith.constant dense<0.000000e+00> : vector<96x1xf32>
    %2 = tpu.matmul %0, %1, %cst {dimension_numbers = #tpu.dot_dimension_numbers<[1], [0], [0], [1], [0, 0, 1, 1], [], []>} : vector<96x10xf32>, vector<10x1xf32>, vector<96x1xf32> -> vector<96x1xf32>
    %c0_3 = arith.constant 0 : index
    %c0_4 = arith.constant 0 : index
    %3 = vector.load %arg3[%c0_3, %c0_4] : memref<1x1xf32, #tpu.memory_space<vmem>>, vector<1x1xf32>
    %4 = vector.broadcast %3 : vector<1x1xf32> to vector<96x1xf32>
    %5 = arith.addf %2, %4 : vector<96x1xf32>
    %c0_5 = arith.constant 0 : index
    %c0_6 = arith.constant 0 : index
    %6 = vector.load %arg4[%c0_5, %c0_6] : memref<96x1xf32, #tpu.memory_space<vmem>>, vector<96x1xf32>
    tpu.vector_store %arg4[%c0_5, %c0_6], %5 {strides = array<i32>} : memref<96x1xf32, #tpu.memory_space<vmem>>, vector<96x1xf32>,
    return
  }
  func.func @transform_0(%arg0: i32) -> (i32, i32) {
    %c0_i32 = arith.constant 0 : i32
    %c0_i32_0 = arith.constant 0 : i32
    return %arg0, %c0_i32 : i32, i32
  }
  func.func @transform_1(%arg0: i32) -> (i32, i32) {
    %c0_i32 = arith.constant 0 : i32
    %c0_i32_0 = arith.constant 0 : i32
    %c0_i32_1 = arith.constant 0 : i32
    return %c0_i32, %c0_i32_0 : i32, i32
  }
  func.func @transform_2(%arg0: i32) -> (i32, i32) {
    %c0_i32 = arith.constant 0 : i32
    %c0_i32_0 = arith.constant 0 : i32
    %c0_i32_1 = arith.constant 0 : i32
    return %c0_i32, %c0_i32_0 : i32, i32
  }
  func.func @transform_3(%arg0: i32) -> (i32, i32) {
    %c0_i32 = arith.constant 0 : i32
    %c0_i32_0 = arith.constant 0 : i32
    return %arg0, %c0_i32 : i32, i32
  }
}

</mosaic_0001>

<bundles_post_ra>
// kernel: net_with_function_forward.1
= control target key start
LH: loop header
LB: loop body
LE: loop exit
PB: predicated region body
PF: predicated region fallthrough
CT: control target
= control target key end

     0   :  { %vm71_vm0 = vcmask 1041408   ;;  %vm34_vm1 = vcmask 80896   ;;  %vm128_vm2 = vcmask 7168   ;;  %s290_s1 = inlined_call_operand.vmem [shape: f32[10,1], index: 1, kind: input, shape index: {}]   ;;  %s291_s0 = inlined_call_operand.vmem [shape: f32[96,10], index: 0, kind: input, shape index: {}]   ;;  %s292_s2 = inlined_call_operand.<no memory space> [shape: f32[1,1], index: 2, kind: input, shape index: {}]   ;;  %s293_s3 = inlined_call_operand.vmem [shape: f32[96,1], index: 3, kind: output, shape index: {}]  }
   0x1   :  { %v29_v0 = vld [vmem:[%s290_s1 + $0x8] sm:$0x3]  ;;  %v28_v1 = vld [vmem:[%s290_s1] sm:$0xff]  ;;  %v8_v2 = vstv %s292_s2  ;;  %v22_v3 = vld [vmem:[%s291_s0 + $0x30] sm:$0xff] }
   0x2   :  { %159 = vmatpush.msk.msra.mxu2 %vm71_vm0, %v29_v0  ;;  %160 = vmatpush.msk.msra.mxu3 %vm71_vm0, %v29_v0  ;;  %v25_v4 = vld [vmem:[%s291_s0 + $0x48] sm:$0xff]  ;;  %9 = vst [vmem:[#allocation2] sm:$0x1] %v8_v2  ;;  %v16_v5 = vld [vmem:[%s291_s0] sm:$0xff]  ;;  %v19_v6 = vld [vmem:[%s291_s0 + $0x18] sm:$0xff] }
   0x3   :  { %145 = vmatpush.msk.msra.mxu0 %vm71_vm0, %v29_v0  ;;  %158 = vmatpush.msk.msra.mxu1 %vm71_vm0, %v29_v0  ;;  %v23_v7 = vld [vmem:[%s291_s0 + $0x38] sm:$0xff]  ;;  %v26_v8 = vld [vmem:[%s291_s0 + $0x50] sm:$0xff]  ;;  %v17_v9 = vld [vmem:[%s291_s0 + $0x8] sm:$0xff] }
   0x4   :  { %162 = vmatpush.msra.mxu2 %v28_v1  ;;  %163 = vmatpush.msra.mxu3 %v28_v1  ;;  %v20_v10 = vld [vmem:[%s291_s0 + $0x20] sm:$0xff]  ;;  %v27_v12 = vld [vmem:[%s291_s0 + $0x58] sm:$0xff]  ;;  %v18_v13 = vld [vmem:[%s291_s0 + $0x10] sm:$0xff] }
   0x5   :  { %152 = vmatmul.msk.f32.vlgmr.msra.gmra.mxu2 %vm34_vm1, %v22_v3  ;;  %155 = vmatmul.msk.f32.vlgmr.msra.gmra.mxu3 %vm34_vm1, %v25_v4  ;;  %v24_v11 = vld [vmem:[%s291_s0 + $0x40] sm:$0xff]  ;;  %v21_v14 = vld [vmem:[%s291_s0 + $0x28] sm:$0xff] }
   0x6   :  { %90 = vmatpush.msra.mxu0 %v28_v1  ;;  %161 = vmatpush.msra.mxu1 %v28_v1 }
   0x7   :  { %146 = vmatmul.msk.f32.vlgmr.msra.gmra.mxu0 %vm34_vm1, %v16_v5  ;;  %149 = vmatmul.msk.f32.vlgmr.msra.gmra.mxu1 %vm34_vm1, %v19_v6 }
   0x9   :  { %v164_v15 = vld [vmem:[#allocation2] ss:$0 sm:$0xff] }
   0xd   :  { %153 = vmatmul.msk.f32.gmra.mxu2 %vm34_vm1, %v23_v7  ;;  %156 = vmatmul.msk.f32.gmra.mxu3 %vm34_vm1, %v26_v8 }
   0xf   :  { %147 = vmatmul.msk.f32.gmra.mxu0 %vm34_vm1, %v17_v9  ;;  %150 = vmatmul.msk.f32.gmra.mxu1 %vm34_vm1, %v20_v10 }
  0x15   :  { %154 = vmatmul.msk.f32.gmra.mxu2 %vm34_vm1, %v24_v11  ;;  %157 = vmatmul.msk.f32.gmra.mxu3 %vm34_vm1, %v27_v12 }
  0x17   :  { %148 = vmatmul.msk.f32.gmra.mxu0 %vm34_vm1, %v18_v13  ;;  %151 = vmatmul.msk.f32.gmra.mxu1 %vm34_vm1, %v21_v14 }
  0x84   :  { %v92_v16 = vpop.f32.mrf.mxu0  ;;  %v101_v17 = vpop.f32.mrf.mxu1 }
  0x85   :  { %v93_v18 = vadd.f32 %v164_v15, %v92_v16  ;;  %v102_v19 = vadd.f32 %v164_v15, %v101_v17 }
  0x87   :  { %129 = vst.msk [vmem:[%s293_s3] sm:$0xff] %vm128_vm2, %v93_v18 }
  0x88   :  { %132 = vst.msk [vmem:[%s293_s3 + $0x18] sm:$0xff] %vm128_vm2, %v102_v19  ;;  %v110_v20 = vpop.f32.mrf.mxu2  ;;  %v119_v21 = vpop.f32.mrf.mxu3 }
  0x89   :  { %v111_v22 = vadd.f32 %v164_v15, %v110_v20  ;;  %v120_v23 = vadd.f32 %v164_v15, %v119_v21 }
  0x8b   :  { %135 = vst.msk [vmem:[%s293_s3 + $0x30] sm:$0xff] %vm128_vm2, %v111_v22 }
  0x8c   :  { %138 = vst.msk [vmem:[%s293_s3 + $0x48] sm:$0xff] %vm128_vm2, %v120_v23  ;;  %v95_v24 = vpop.f32.mrf.mxu0  ;;  %v104_v25 = vpop.f32.mrf.mxu1 }
  0x8d   :  { %v96_v26 = vadd.f32 %v164_v15, %v95_v24  ;;  %v105_v27 = vadd.f32 %v164_v15, %v104_v25 }
  0x8f   :  { %130 = vst.msk [vmem:[%s293_s3 + $0x8] sm:$0xff] %vm128_vm2, %v96_v26 }
  0x90   :  { %133 = vst.msk [vmem:[%s293_s3 + $0x20] sm:$0xff] %vm128_vm2, %v105_v27  ;;  %v113_v28 = vpop.f32.mrf.mxu2  ;;  %v122_v29 = vpop.f32.mrf.mxu3 }
  0x91   :  { %v114_v30 = vadd.f32 %v164_v15, %v113_v28  ;;  %v123_v31 = vadd.f32 %v164_v15, %v122_v29 }
  0x93   :  { %136 = vst.msk [vmem:[%s293_s3 + $0x38] sm:$0xff] %vm128_vm2, %v114_v30 }
  0x94   :  { %139 = vst.msk [vmem:[%s293_s3 + $0x50] sm:$0xff] %vm128_vm2, %v123_v31  ;;  %v98_v32 = vpop.f32.mrf.mxu0  ;;  %v107_v33 = vpop.f32.mrf.mxu1 }
  0x95   :  { %v99_v34 = vadd.f32 %v164_v15, %v98_v32  ;;  %v108_v35 = vadd.f32 %v164_v15, %v107_v33 }
  0x97   :  { %131 = vst.msk [vmem:[%s293_s3 + $0x10] sm:$0xff] %vm128_vm2, %v99_v34 }
  0x98   :  { %134 = vst.msk [vmem:[%s293_s3 + $0x28] sm:$0xff] %vm128_vm2, %v108_v35  ;;  %v116_v36 = vpop.f32.mrf.mxu2  ;;  %v125_v37 = vpop.f32.mrf.mxu3 }
  0x99   :  { %v117_v38 = vadd.f32 %v164_v15, %v116_v36  ;;  %v126_v39 = vadd.f32 %v164_v15, %v125_v37 }
  0x9b   :  { %137 = vst.msk [vmem:[%s293_s3 + $0x40] sm:$0xff] %vm128_vm2, %v117_v38 }
  0x9c   :  { %140 = vst.msk [vmem:[%s293_s3 + $0x58] sm:$0xff] %vm128_vm2, %v126_v39 }

</bundles_post_ra>
